<compile_context>
chip_gen: v7x
topology: tpu7x:2x2x1
jax: 0.10.0
libtpu: 0.0.40
codegen_flags: <defaults>
</compile_context>

<pallas_src>
import math

import jax
import jax.numpy as jnp
from jax.experimental import pallas as pl
from jax.experimental.pallas import tpu as pltpu


def _round_up(x, m):
    return ((x + m - 1) // m) * m


def _net_kernel(coeffs_ref, derivs_ref, central_ref, neigh_ref,
                w1_ref, b1_ref, wl_ref, bl_ref,
                e_ref, f_ref, dfdws_scr):
    # coeffs_ref:  (N, D)        per-atom descriptors, resident across the grid
    # derivs_ref:  (3, Pt, D)    descriptor derivatives, pipelined over P tiles
    # central_ref: (Pt, 1) i32   central atom index per pair
    # neigh_ref:   (Pt, 1) i32   neighbor atom index per pair (-1 on padding)
    # w1/b1/wl:    (1, D)        parameters; bl: (1, 1) scalar in SMEM
    # e_ref:       (1, 1)        energy output (resident, written at step 0)
    # f_ref:       (3, N)        collated-force accumulator (resident)
    # dfdws_scr:   (N, D)        -(w1*wl) * (1 - tanh^2), built once at step 0
    pid = pl.program_id(0)
    n_atoms = coeffs_ref.shape[0]
    p_tile = derivs_ref.shape[1]

    @pl.when(pid == 0)
    def _():
        w1 = w1_ref[...]
        wl = wl_ref[...]
        # ---- energy path: E = sum(tanh(coeffs*w1 + b1) * wl) / N + b_last
        e_pa = jnp.tanh(coeffs_ref[...] * w1 + b1_ref[...])            # (N, D)
        energy = jnp.sum(e_pa * wl) / n_atoms + bl_ref[0, 0]
        e_ref[...] = jnp.reshape(energy, (1, 1))
        # fold the constant -(w1*wl) scale (and the minus sign) into the
        # per-atom dfdw table once; the hot loop reuses it every grid step.
        dfdws_scr[...] = (1.0 - e_pa * e_pa) * (-(w1 * wl))            # (N, D)
        f_ref[...] = jnp.zeros_like(f_ref)

    atom_iota = jax.lax.broadcasted_iota(jnp.int32, (p_tile, n_atoms), 1)

    # ---- gather dfdw rows at this tile's central atoms via one-hot matmul (MXU)
    central_oh = (central_ref[...] == atom_iota).astype(jnp.float32)   # (Pt, N)
    dfdws_c = jnp.dot(central_oh, dfdws_scr[...],
                      preferred_element_type=jnp.float32)              # (Pt, D)

    # ---- force path: ONE elementwise multiply on the dominant (3, Pt, D)
    #      operand, then reduce over the descriptor (lane) axis.
    fred = jnp.sum(dfdws_c[None, :, :] * derivs_ref[...], axis=2)      # (3, Pt)

    # ---- scatter-add over neighbor indices as a one-hot matmul, accumulated
    #      into the resident (3, N) output block (padded rows have neigh=-1
    #      which never matches, so they contribute nothing).
    neigh_oh = (neigh_ref[...] == atom_iota).astype(jnp.float32)       # (Pt, N)
    f_ref[...] += jnp.dot(fred, neigh_oh, preferred_element_type=jnp.float32)


def net_forward(coeffs, coeffs_derivs, central_atom_index, neigh_atom_index,
                params, *, p_tile=128):
    """Returns (e_pa, out_f) matching the PyTorch module's forward."""
    w1, b1, wl, bl = params
    B, N, D = coeffs.shape
    assert B == 1, "module hardcodes out_f batch of 1"
    P = coeffs_derivs.shape[2]
    f32 = jnp.float32

    coeffs2d = coeffs[0].astype(f32)                                   # (N, D)
    derivs = coeffs_derivs[0].astype(f32)                              # (3, P, D)
    central = central_atom_index.astype(jnp.int32).reshape(P, 1)
    neigh = neigh_atom_index.astype(jnp.int32).reshape(P, 1)

    # pair-axis tiling: multiple of 8 sublanes; pad P so the grid divides
    # evenly (zero-padded derivs rows contribute nothing; padded neigh = -1
    # never matches the atom iota).
    tile = _round_up(min(p_tile, _round_up(P, 8)), 8)
    p_pad = _round_up(P, tile)
    if p_pad != P:
        pad = p_pad - P
        derivs = jnp.pad(derivs, ((0, 0), (0, pad), (0, 0)))
        central = jnp.pad(central, ((0, pad), (0, 0)))
        neigh = jnp.pad(neigh, ((0, pad), (0, 0)), constant_values=-1)
    num_tiles = p_pad // tile

    e, f = pl.pallas_call(
        _net_kernel,
        out_shape=(jax.ShapeDtypeStruct((1, 1), f32),
                   jax.ShapeDtypeStruct((3, N), f32)),
        grid_spec=pltpu.PrefetchScalarGridSpec(
            num_scalar_prefetch=0,
            grid=(num_tiles,),
            in_specs=[
                pl.BlockSpec((N, D), lambda i: (0, 0)),              # coeffs (resident)
                pl.BlockSpec((3, tile, D), lambda i: (0, i, 0)),     # derivs (pipelined)
                pl.BlockSpec((tile, 1), lambda i: (i, 0)),           # central idx
                pl.BlockSpec((tile, 1), lambda i: (i, 0)),           # neigh idx
                pl.BlockSpec((1, D), lambda i: (0, 0)),              # w1
                pl.BlockSpec((1, D), lambda i: (0, 0)),              # b1
                pl.BlockSpec((1, D), lambda i: (0, 0)),              # wl
                pl.BlockSpec(memory_space=pltpu.MemorySpace.SMEM),   # bl scalar
            ],
            out_specs=(
                pl.BlockSpec((1, 1), lambda i: (0, 0)),              # energy
                pl.BlockSpec((3, N), lambda i: (0, 0)),              # force accumulator
            ),
            scratch_shapes=[pltpu.VMEM((N, D), f32)],                # dfdw * -(w1*wl)
        ),
        compiler_params=pltpu.CompilerParams(
            dimension_semantics=("arbitrary",)),
    )(coeffs2d, derivs, central, neigh,
      w1.reshape(1, D).astype(f32), b1.reshape(1, D).astype(f32),
      wl.reshape(1, D).astype(f32), bl.reshape(1, 1).astype(f32))

    return e.reshape(1), f[None, :, :]                                # (1,), (1,3,N)


def _reference(coeffs, coeffs_derivs, central, neigh, params):
    """Pure-JAX transcription of the PyTorch forward for verification."""
    w1, b1, wl, bl = params
    N = coeffs.shape[1]
    e_pa = jnp.tanh(coeffs * w1 + b1)                                  # (1, N, D)
    dfdw = 1.0 - e_pa ** 2
    f = dfdw[:, central, :][:, None, :, :] * (coeffs_derivs * w1)      # (1, 3, P, D)
    energy = jnp.sum(e_pa * wl) / N + bl                               # (1,)
    fred = -jnp.sum(f * wl, axis=3)                                    # (1, 3, P)
    onehot = (neigh[:, None] == jnp.arange(N)[None, :]).astype(fred.dtype)
    out_f = jnp.einsum('bcp,pn->bcn', fred, onehot)                    # (1, 3, N)
    return energy, out_f


if __name__ == "__main__":
    # small-but-nontrivial shapes: 1 batch, 16 atoms, 64 descriptors, 40 pairs.
    # p_tile=16 -> 3 grid steps (including one zero-padded tile) so the
    # accumulator / pipelining / padding paths are all exercised.
    N_ATOMS, N_DESC, N_PAIRS = 16, 64, 40

    key = jax.random.PRNGKey(0)
    kw1, kwl, kc, kd, ki1, ki2 = jax.random.split(key, 6)

    # deterministic parameter init mirroring reset_parameters():
    # uniform(-sqrt(6/3), sqrt(6/3)) weights, zero biases
    stdv = math.sqrt(6.0 / (1 + 1 + 1))
    w1 = jax.random.uniform(kw1, (N_DESC,), jnp.float32, -stdv, stdv)
    b1 = jnp.zeros((N_DESC,), jnp.float32)
    wl = jax.random.uniform(kwl, (N_DESC,), jnp.float32, -stdv, stdv)
    bl = jnp.zeros((1,), jnp.float32)
    params = (w1, b1, wl, bl)

    coeffs = jax.random.normal(kc, (1, N_ATOMS, N_DESC), jnp.float32)
    coeffs_derivs = jax.random.normal(kd, (1, 3, N_PAIRS, N_DESC), jnp.float32)
    central_atom_index = jax.random.randint(ki1, (N_PAIRS,), 0, N_ATOMS)
    neigh_atom_index = jax.random.randint(ki2, (N_PAIRS,), 0, N_ATOMS)

    e_out, f_out = net_forward(coeffs, coeffs_derivs,
                               central_atom_index, neigh_atom_index, params,
                               p_tile=16)
    jax.block_until_ready((e_out, f_out))

    e_exp, f_exp = _reference(coeffs, coeffs_derivs,
                              central_atom_index, neigh_atom_index, params)
    assert e_out.shape == (1,) and f_out.shape == (1, 3, N_ATOMS)
    # float32 (PyTorch ref is f64); tolerances loosened accordingly.
    assert jnp.allclose(e_out, e_exp, rtol=1e-4, atol=1e-4)
    assert jnp.allclose(f_out, f_exp, rtol=1e-4, atol=1e-4)

    print("KERNEL_OK")
</pallas_src>

<mosaic_0001>
module attributes {stable_mosaic.version = 11 : i64} {
  func.func @_net_kernel(%arg0: i32, %arg1: memref<16x64xf32, #tpu.memory_space<vmem>>, %arg2: memref<3x16x64xf32, #tpu.memory_space<vmem>>, %arg3: memref<16x1xi32, #tpu.memory_space<vmem>>, %arg4: memref<16x1xi32, #tpu.memory_space<vmem>>, %arg5: memref<1x64xf32, #tpu.memory_space<vmem>>, %arg6: memref<1x64xf32, #tpu.memory_space<vmem>>, %arg7: memref<1x64xf32, #tpu.memory_space<vmem>>, %arg8: memref<1x1xf32, #tpu.memory_space<smem>>, %arg9: memref<1x1xf32, #tpu.memory_space<vmem>>, %arg10: memref<3x16xf32, #tpu.memory_space<vmem>>, %arg11: memref<16x64xf32, #tpu.memory_space<vmem>>) attributes {dimension_semantics = [#tpu.dimension_semantics<arbitrary>], iteration_bounds = array<i64: 3>, scalar_prefetch = 0 : i64, scratch_operands = 1 : i64, tpu.core_type = #tpu.core_type<tc>, window_params = [{pipeline_mode = #tpu.pipeline_mode<synchronous>, transform_indices = @transform_0, window_bounds = array<i64: 16, 64>}, {transform_indices = @transform_1, window_bounds = array<i64: 3, 16, 64>}, {transform_indices = @transform_2, window_bounds = array<i64: 16, 1>}, {transform_indices = @transform_3, window_bounds = array<i64: 16, 1>}, {pipeline_mode = #tpu.pipeline_mode<synchronous>, transform_indices = @transform_4, window_bounds = array<i64: 1, 64>}, {pipeline_mode = #tpu.pipeline_mode<synchronous>, transform_indices = @transform_5, window_bounds = array<i64: 1, 64>}, {pipeline_mode = #tpu.pipeline_mode<synchronous>, transform_indices = @transform_6, window_bounds = array<i64: 1, 64>}, {transform_indices = @transform_7, window_bounds = array<i64: 1, 1>}, {pipeline_mode = #tpu.pipeline_mode<synchronous>, transform_indices = @transform_8, window_bounds = array<i64: 1, 1>}, {pipeline_mode = #tpu.pipeline_mode<synchronous>, transform_indices = @transform_9, window_bounds = array<i64: 3, 16>}]} {
    %c0_i32 = arith.constant 0 : i32
    %0 = arith.cmpi eq, %arg0, %c0_i32 : i32
    %1 = arith.extui %0 : i1 to i32
    %c0_i32_0 = arith.constant 0 : i32
    %2 = arith.cmpi ne, %1, %c0_i32_0 : i32
    scf.if %2 {
      %c0_15 = arith.constant 0 : index
      %c0_16 = arith.constant 0 : index
      %25 = vector.load %arg5[%c0_15, %c0_16] : memref<1x64xf32, #tpu.memory_space<vmem>>, vector<1x64xf32>
      %c0_17 = arith.constant 0 : index
      %c0_18 = arith.constant 0 : index
      %26 = vector.load %arg7[%c0_17, %c0_18] : memref<1x64xf32, #tpu.memory_space<vmem>>, vector<1x64xf32>
      %c0_19 = arith.constant 0 : index
      %c0_20 = arith.constant 0 : index
      %27 = vector.load %arg1[%c0_19, %c0_20] : memref<16x64xf32, #tpu.memory_space<vmem>>, vector<16x64xf32>
      %28 = vector.broadcast %25 : vector<1x64xf32> to vector<16x64xf32>
      %29 = arith.mulf %27, %28 : vector<16x64xf32>
      %c0_21 = arith.constant 0 : index
      %c0_22 = arith.constant 0 : index
      %30 = vector.load %arg6[%c0_21, %c0_22] : memref<1x64xf32, #tpu.memory_space<vmem>>, vector<1x64xf32>
      %31 = vector.broadcast %30 : vector<1x64xf32> to vector<16x64xf32>
      %32 = arith.addf %29, %31 : vector<16x64xf32>
      %33 = math.tanh %32 : vector<16x64xf32>
      %34 = vector.broadcast %26 : vector<1x64xf32> to vector<16x64xf32>
      %35 = arith.mulf %33, %34 : vector<16x64xf32>
      %36 = vector.shape_cast %35 : vector<16x64xf32> to vector<1x16x64xf32>
      %cst_23 = arith.constant dense<0.000000e+00> : vector<1xf32>
      %37 = vector.multi_reduction <add>, %36, %cst_23 [1, 2] : vector<1x16x64xf32> to vector<1xf32>
      %38 = vector.shape_cast %37 : vector<1xf32> to vector<1x1x1xf32>
      %39 = vector.extract %38[0, 0, 0] : f32 from vector<1x1x1xf32>
      %cst_24 = arith.constant 1.600000e+01 : f32
      %40 = arith.divf %39, %cst_24 : f32
      %c0_25 = arith.constant 0 : index
      %c0_26 = arith.constant 0 : index
      %41 = memref.load %arg8[%c0_25, %c0_26] : memref<1x1xf32, #tpu.memory_space<smem>>
      %42 = arith.addf %40, %41 : f32
      %43 = vector.broadcast %42 : f32 to vector<1x1xf32>
      %c0_27 = arith.constant 0 : index
      %c0_28 = arith.constant 0 : index
      %44 = vector.load %arg9[%c0_27, %c0_28] : memref<1x1xf32, #tpu.memory_space<vmem>>, vector<1x1xf32>
      tpu.vector_store %arg9[%c0_27, %c0_28], %43 {strides = array<i32>} : memref<1x1xf32, #tpu.memory_space<vmem>>, vector<1x1xf32>,
      %45 = arith.mulf %33, %33 : vector<16x64xf32>
      %cst_29 = arith.constant 1.000000e+00 : f32
      %46 = vector.broadcast %cst_29 : f32 to vector<16x64xf32>
      %47 = arith.subf %46, %45 : vector<16x64xf32>
      %48 = arith.mulf %25, %26 : vector<1x64xf32>
      %cst_30 = arith.constant 0.000000e+00 : f32
      %49 = vector.broadcast %cst_30 : f32 to vector<1x64xf32>
      %50 = arith.subf %49, %48 : vector<1x64xf32>
      %51 = vector.broadcast %50 : vector<1x64xf32> to vector<16x64xf32>
      %52 = arith.mulf %47, %51 : vector<16x64xf32>
      %c0_31 = arith.constant 0 : index
      %c0_32 = arith.constant 0 : index
      %53 = vector.load %arg11[%c0_31, %c0_32] : memref<16x64xf32, #tpu.memory_space<vmem>>, vector<16x64xf32>
      tpu.vector_store %arg11[%c0_31, %c0_32], %52 {strides = array<i32>} : memref<16x64xf32, #tpu.memory_space<vmem>>, vector<16x64xf32>,
      %cst_33 = arith.constant 0.000000e+00 : f32
      %54 = vector.broadcast %cst_33 : f32 to vector<3x16xf32>
      %c0_34 = arith.constant 0 : index
      %c0_35 = arith.constant 0 : index
      %55 = vector.load %arg10[%c0_34, %c0_35] : memref<3x16xf32, #tpu.memory_space<vmem>>, vector<3x16xf32>
      tpu.vector_store %arg10[%c0_34, %c0_35], %54 {strides = array<i32>} : memref<3x16xf32, #tpu.memory_space<vmem>>, vector<3x16xf32>,
    } else {
    }
    %3 = tpu.iota {dimensions = array<i32: 1>} : vector<16x16xi32>
    %c0 = arith.constant 0 : index
    %c0_1 = arith.constant 0 : index
    %4 = vector.load %arg3[%c0, %c0_1] : memref<16x1xi32, #tpu.memory_space<vmem>>, vector<16x1xi32>
    %5 = vector.broadcast %4 : vector<16x1xi32> to vector<16x16xi32>
    %6 = arith.cmpi eq, %5, %3 : vector<16x16xi32>
    %7 = arith.extui %6 : vector<16x16xi1> to vector<16x16xi32>
    %8 = arith.sitofp %7 : vector<16x16xi32> to vector<16x16xf32>
    %c0_2 = arith.constant 0 : index
    %c0_3 = arith.constant 0 : index
    %9 = vector.load %arg11[%c0_2, %c0_3] : memref<16x64xf32, #tpu.memory_space<vmem>>, vector<16x64xf32>
    %cst = arith.constant dense<0.000000e+00> : vector<16x64xf32>
    %10 = tpu.matmul %8, %9, %cst {dimension_numbers = #tpu.dot_dimension_numbers<[1], [0], [0], [1], [0, 0, 1, 1], [], []>} : vector<16x16xf32>, vector<16x64xf32>, vector<16x64xf32> -> vector<16x64xf32>
    %11 = vector.shape_cast %10 : vector<16x64xf32> to vector<1x16x64xf32>
    %c0_4 = arith.constant 0 : index
    %c0_5 = arith.constant 0 : index
    %c0_6 = arith.constant 0 : index
    %12 = vector.load %arg2[%c0_4, %c0_5, %c0_6] : memref<3x16x64xf32, #tpu.memory_space<vmem>>, vector<3x16x64xf32>
    %13 = vector.broadcast %11 : vector<1x16x64xf32> to vector<3x16x64xf32>
    %14 = arith.mulf %13, %12 : vector<3x16x64xf32>
    %cst_7 = arith.constant dense<0.000000e+00> : vector<3x16xf32>
    %15 = vector.multi_reduction <add>, %14, %cst_7 [2] : vector<3x16x64xf32> to vector<3x16xf32>
    %c0_8 = arith.constant 0 : index
    %c0_9 = arith.constant 0 : index
    %16 = vector.load %arg4[%c0_8, %c0_9] : memref<16x1xi32, #tpu.memory_space<vmem>>, vector<16x1xi32>
    %17 = vector.broadcast %16 : vector<16x1xi32> to vector<16x16xi32>
    %18 = arith.cmpi eq, %17, %3 : vector<16x16xi32>
    %19 = arith.extui %18 : vector<16x16xi1> to vector<16x16xi32>
    %20 = arith.sitofp %19 : vector<16x16xi32> to vector<16x16xf32>
    %c0_10 = arith.constant 0 : index
    %c0_11 = arith.constant 0 : index
    %21 = vector.load %arg10[%c0_10, %c0_11] : memref<3x16xf32, #tpu.memory_space<vmem>>, vector<3x16xf32>
    %cst_12 = arith.constant dense<0.000000e+00> : vector<3x16xf32>
    %22 = tpu.matmul %15, %20, %cst_12 {dimension_numbers = #tpu.dot_dimension_numbers<[1], [0], [0], [1], [0, 0, 1, 1], [], []>} : vector<3x16xf32>, vector<16x16xf32>, vector<3x16xf32> -> vector<3x16xf32>
    %23 = arith.addf %21, %22 : vector<3x16xf32>
    %c0_13 = arith.constant 0 : index
    %c0_14 = arith.constant 0 : index
    %24 = vector.load %arg10[%c0_13, %c0_14] : memref<3x16xf32, #tpu.memory_space<vmem>>, vector<3x16xf32>
    tpu.vector_store %arg10[%c0_13, %c0_14], %23 {strides = array<i32>} : memref<3x16xf32, #tpu.memory_space<vmem>>, vector<3x16xf32>,
    return
  }
  func.func @transform_0(%arg0: i32) -> (i32, i32) {
    %c0_i32 = arith.constant 0 : i32
    %c0_i32_0 = arith.constant 0 : i32
    %c0_i32_1 = arith.constant 0 : i32
    return %c0_i32, %c0_i32_0 : i32, i32
  }
  func.func @transform_1(%arg0: i32) -> (i32, i32, i32) {
    %c0_i32 = arith.constant 0 : i32
    %c0_i32_0 = arith.constant 0 : i32
    %c0_i32_1 = arith.constant 0 : i32
    return %c0_i32, %arg0, %c0_i32_0 : i32, i32, i32
  }
  func.func @transform_2(%arg0: i32) -> (i32, i32) {
    %c0_i32 = arith.constant 0 : i32
    %c0_i32_0 = arith.constant 0 : i32
    return %arg0, %c0_i32 : i32, i32
  }
  func.func @transform_3(%arg0: i32) -> (i32, i32) {
    %c0_i32 = arith.constant 0 : i32
    %c0_i32_0 = arith.constant 0 : i32
    return %arg0, %c0_i32 : i32, i32
  }
  func.func @transform_4(%arg0: i32) -> (i32, i32) {
    %c0_i32 = arith.constant 0 : i32
    %c0_i32_0 = arith.constant 0 : i32
    %c0_i32_1 = arith.constant 0 : i32
    return %c0_i32, %c0_i32_0 : i32, i32
  }
  func.func @transform_5(%arg0: i32) -> (i32, i32) {
    %c0_i32 = arith.constant 0 : i32
    %c0_i32_0 = arith.constant 0 : i32
    %c0_i32_1 = arith.constant 0 : i32
    return %c0_i32, %c0_i32_0 : i32, i32
  }
  func.func @transform_6(%arg0: i32) -> (i32, i32) {
    %c0_i32 = arith.constant 0 : i32
    %c0_i32_0 = arith.constant 0 : i32
    %c0_i32_1 = arith.constant 0 : i32
    return %c0_i32, %c0_i32_0 : i32, i32
  }
  func.func @transform_7(%arg0: i32) -> (i32, i32) {
    %c0_i32 = arith.constant 0 : i32
    %c0_i32_0 = arith.constant 0 : i32
    %c0_i32_1 = arith.constant 0 : i32
    return %c0_i32, %c0_i32_0 : i32, i32
  }
  func.func @transform_8(%arg0: i32) -> (i32, i32) {
    %c0_i32 = arith.constant 0 : i32
    %c0_i32_0 = arith.constant 0 : i32
    %c0_i32_1 = arith.constant 0 : i32
    return %c0_i32, %c0_i32_0 : i32, i32
  }
  func.func @transform_9(%arg0: i32) -> (i32, i32) {
    %c0_i32 = arith.constant 0 : i32
    %c0_i32_0 = arith.constant 0 : i32
    %c0_i32_1 = arith.constant 0 : i32
    return %c0_i32, %c0_i32_0 : i32, i32
  }
}

</mosaic_0001>

<bundles_post_ra>
// kernel: tpu_custom_call.1
= control target key start
LH: loop header
LB: loop body
LE: loop exit
PB: predicated region body
PF: predicated region fallthrough
CT: control target
= control target key end

     0   :  { %s1334_s0 = inlined_call_operand.vmem [shape: f32[16,64], index: 0, kind: input, shape index: {}]   ;;  %s1335_s1 = inlined_call_operand.hbm [shape: f32[3,48,64], index: 1, kind: input, shape index: {}]   ;;  %s1336_s2 = inlined_call_operand.vmem [shape: s32[48,1], index: 2, kind: input, shape index: {}]   ;;  %s1337_s3 = inlined_call_operand.vmem [shape: s32[48,1], index: 3, kind: input, shape index: {}]   ;;  %s1338_s4 = inlined_call_operand.vmem [shape: f32[1,64], index: 4, kind: input, shape index: {}]   ;;  %s1339_s5 = inlined_call_operand.vmem [shape: f32[1,64], index: 5, kind: input, shape index: {}]   ;;  %s1340_s6 = inlined_call_operand.vmem [shape: f32[1,64], index: 6, kind: input, shape index: {}]   ;;  %s1341_s7 = inlined_call_operand.<no memory space> [shape: f32[1,1], index: 7, kind: input, shape index: {}]   ;;  %s1342_s8 = inlined_call_operand.hbm [shape: f32[1,1], index: 8, kind: output, shape index: {0}]   ;;  %s1343_s9 = inlined_call_operand.hbm [shape: f32[3,16], index: 9, kind: output, shape index: {1}]  }
   0x1   :  { %15 = sst [smem:[#allocation3]] %s1341_s7 }
   0x2   :  { %16 = vsyncpa [#allocation5], 0 }
   0x3   :  { %18 = vsyncpa [#allocation5 + $0x1], 0 }
   0x4   :  { %19 = vsyncpa [#allocation6], 0 }
   0x5   :  { %20 = vsyncpa [#allocation9], 0  ;;  %s1144_s11 = smov 0   ;;  %s1146_s12 = smov 0  }
   0x6   :  { %s1148_s13 = smov 0   ;;  %s1150_s14 = smov 0  }
   0x7 LB: > { %s1163_s7 = sadd.s32 4294967295, %s1075_s14   ;;  %s1166_s15 = sadd.s32 1, %s1075_s14   ;;  %s1075_s14 = sphi %s1150_s14, %s1349_s14   ;;  %s1071_s13 = sphi %s1148_s13, %s1348_s13   ;;  %s1067_s12 = sphi %s1146_s12, %s1347_s12   ;;  %s1063_s11 = sphi %s1144_s11, %s1346_s11  }
   0x8   : > { %s51_s16 = ssub.s32 %s1075_s14, %s1166_s15  ;;  %s54_s17 = sadd.s32 1, %s1071_s13 }
   0x9   : > { %p52_p0 = scmp.eq.s32.totalorder %s51_s16, 0  ;;  %p61_p1 = scmp.ne.s32.totalorder %s1071_s13, %s1067_s12 }
   0xa   : > { %p62_p2 = scmp.eq.s32.totalorder %s1075_s14, 0  ;;  %p67_p3 = scmp.ne.s32.totalorder %s1067_s12, %s1063_s11 }
   0xb   : > { %s1176_s18 = scalar_select %p52_p0, %s1071_s13, %s54_s17  }
   0xc   : > { %p1178_p4 = por %p62_p2, %p61_p1  ;;  %p68_p5 = scmp.eq.s32.totalorder %s1163_s7, 0 }
   0xd   : > { %p848_p7 = scmp.ge.s32.totalorder %s1075_s14, 3 }
   0xe   : > { %p1183_p6 = por %p68_p5, %p67_p3 }
   0xf   : > { %280 = sbr.rel (%p848_p7) target bundleno = 36 (0x24), region = 36 }
  0x16   : > { %s284_s21 = sand.u32 1, %s1071_s13   ;;  %s875_s23 = sshll.u32 %s1075_s14, 8 }
  0x17   : > { %s904_s22 = smul.u32 48, %s284_s21  ;;  %s1077_s24 = smov 768  }
  0x18   : > { %909 = sst [smem:[#allocation11]] (%p1178_p4), %s1077_s24  ;;  %s294_s28 = scalar_lea.hbm %s1335_s1, %s875_s23 }
  0x19   : > { %s908_s25 = scalar_select %p1178_p4, [#allocation0], [#allocation12] }
  0x1a   : > { %s288_s30 = scalar_lea.vmem [#allocation4], %s904_s22  ;;  %s1078_s11 = smov 256  }
  0x1b   : > { %s299_s29 = sld [smem:[%s908_s25]]   ;;  %s307_s10 = sshll.u32 %s288_s30, 4  ;;  %s308_s10 = int_to_ptr.vmem [resolvable:$true] %s307_s10 }
  0x1c   : > { %910 = sst [smem:[#allocation11 + $0x1]] (%p1178_p4), %s1078_s11  ;;  %s1079_s16 = smov 2  }
  0x1d   : > { %911 = sst [smem:[#allocation11 + $0x2]] (%p1178_p4), %s1079_s16  ;;  %s1080_s17 = smov 128  }
  0x1e   : > { %912 = sst [smem:[#allocation11 + $0x3]] (%p1178_p4), %s1080_s17  ;;  %s1081_s24 = smov 8  }
  0x1f   : > { %913 = sst [smem:[#allocation11 + $0x4]] (%p1178_p4), %s1080_s17  ;;  %s285_s22 = scalar_lea.sflag [#allocation5], %s284_s21 }
  0x20   : > { %914 = sst [smem:[#allocation11 + $0x5]] (%p1178_p4), %s1081_s24  ;;  %s1082_s26 = smov [#allocation10]  }
  0x21   : > { %s851_s23 = sshll.u32 %s299_s29, 26 }
  0x22   : > { %s852_s25 = sadd.s32 134217728, %s851_s23 }
  0x23   : > { %915 = dma.general (%p1178_p4), %s294_s28, 768, %s308_s10, %s285_s22, %s1082_s26, [#allocation11], %s852_s25, 0  }
  0x24 PF: > { %p853_p8 = scmp.ge.s32.totalorder %s1075_s14, 1  ;;  %p346_p9 = scmp.lt.s32.totalorder %s1075_s14, 4 }
  0x26   : > { %p347_p10 = pnand %p853_p8, %p346_p9 }
  0x27   : > { %s352_s27 = sand.u32 (!%p347_p10), 1, %s1067_s12  }
  0x28   : > { %350 = sbr.rel (%p347_p10) target bundleno = 1086 (0x43e), region = 52  ;;  %s353_s11 = scalar_lea.sflag (!%p347_p10), [#allocation5], %s352_s27 }
  0x29   : > { %s905_s30 = smul.u32 (!%p347_p10), 48, %s352_s27 }
  0x2b   : > { %s1212_s16 = scalar_lea.vmem (!%p347_p10), [#allocation4], %s905_s30 }
  0x2f   : > { %1050 = dma.done.wait (%p1183_p6), %s353_s11, 768  }
  0x30   : > { %1052 = vsyncadd (%p1183_p6), %s353_s11, 4294966528  ;;  %s854_s19 = sshll.u32 %s1163_s7, 1  ;;  %p858_p12 = scmp.ne.s32.totalorder %s1163_s7, 0 }
  0x31   : > { %p398_p11 = scmp.lt.s32.totalorder %s854_s19, 5  ;;  %v418_v0 = vlaneseq (!%p858_p12)  ;;  %v413_v2 = vld [vmem:[%s1338_s4] sm:$0x1] (!%p858_p12)  ;;  %v416_v5 = vld [vmem:[%s1334_s0 + $0x8] sm:$0xff] (!%p858_p12)  ;;  %vm444_vm0 = vcmask (!%p858_p12), 523264   ;;  %vm481_vm1 = vcmask (!%p858_p12), 124928  }
  0x32   : > { %412 = sbr.rel (%p858_p12) target bundleno = 288 (0x120), region = 60  ;;  %v415_v4 = vld [vmem:[%s1334_s0] sm:$0xff] (!%p858_p12)  ;;  %v1083_v30 = vmov (!%p858_p12), 0.0   ;;  %s460_s14 = sld [smem:[#allocation3]] (!%p858_p12)  ;;  %vm463_vm2 = vcmask (!%p858_p12), 0  }
  0x33   : > { %s1351_s19 = smov (!%p398_p11, %s854_s19), 5  ;;  %v419_v1 = vshrl.u32 (!%p858_p12), %v418_v0, 7  ;;  %v859_v7 = vld [vmem:[%s1339_s5] ss:$0 sm:$0xff] (!%p858_p12)  ;;  %482 = vst.msk [vmem:[#allocation8] sm:$0x7] (!%p858_p12), %vm481_vm1, %v1083_v30 }
  0x34   : > { %s855_s21 = sshll.u32 %s1351_s19, 3  ;;  %v414_v12 = vld [vmem:[%s1340_s6] sm:$0x1] (!%p858_p12) }
  0x35   : > { %s1222_s29 = scalar_lea.vmem %s1336_s2, %s855_s21  ;;  %s1227_s24 = scalar_lea.vmem %s1337_s3, %s855_s21  ;;  %v420_v3 = vsub.s32 (!%p858_p12), 0, %v419_v1  ;;  %v469_v13 = vmul.f32 (!%p858_p12), %v414_v12, %v413_v2 }
  0x37   : > { %v421_v6 = vrot.slane (!%p858_p12), %v413_v2, %v420_v3  ;;  %v440_v14 = vrot.slane (!%p858_p12), %v414_v12, %v420_v3  ;;  %v470_v15 = vsub.f32 (!%p858_p12), 0.0, %v469_v13 }
  0x39   : > { %v423_v8 = vmul.f32 %v421_v6, %v415_v4  ;;  %v424_v9 = vmul.f32 %v421_v6, %v416_v5  ;;  %v475_v20 = vrot.slane %v470_v15, %v420_v3 }
  0x3b   : > { %v432_v10 = vadd.f32 %v859_v7, %v423_v8  ;;  %v433_v11 = vadd.f32 %v859_v7, %v424_v9 }
  0x3d   : > { %975 = vtanh.f32 %v432_v10 }
  0x3e   : > { %977 = vtanh.f32 %v433_v11 }
  0x47   : > { %v976_v16 = vpop.eup %975 }
  0x48   : > { %v978_v17 = vpop.eup %977  ;;  %v442_v18 = vmul.f32 %v976_v16, %v440_v14  ;;  %v465_v19 = vmul.f32 %v976_v16, %v976_v16 }
  0x49   : > { %v443_v21 = vmul.f32 %v978_v17, %v440_v14  ;;  %v466_v22 = vmul.f32 %v978_v17, %v978_v17 }
  0x4a   : > { %v445_v23 = vsel %vm444_vm0, %v442_v18, 0.0  ;;  %v467_v24 = vsub.f32 1.0, %v465_v19 }
  0x4b   : > { %v446_v25 = vsel %vm444_vm0, %v443_v21, 0.0  ;;  %v468_v26 = vsub.f32 1.0, %v466_v22 }
  0x4c   : > { %v447_v27 = vadd.f32 %v446_v25, %v445_v23  ;;  %v477_v28 = vmul.f32 %v475_v20, %v467_v24 }
  0x4d   : > { %v478_v29 = vmul.f32 %v475_v20, %v468_v26 }
  0x4e   : > { %448 = vadd.xlane.f32.xlu0 %v447_v27  ;;  %479 = vst.msk [vmem:[#allocation2] sm:$0xff] %vm444_vm0, %v477_v28 }
  0x4f   : > { %480 = vst.msk [vmem:[#allocation2 + $0x8] sm:$0xff] %vm444_vm0, %v478_v29 }
  0xdb   : > { %v449_v31 = vpop.xlane.xlu0 %448 }
  0xdc   : > { %v450_v32 = vrot.slane %v449_v31, 4 }
  0xde   : > { %v451_v33 = vadd.f32 %v450_v32, %v449_v31 }
  0xe0   : > { %v452_v34 = vrot.slane %v451_v33, 2 }
  0xe2   : > { %v453_v35 = vadd.f32 %v452_v34, %v451_v33 }
  0xe4   : > { %v454_v36 = vrot.slane %v453_v35, 1 }
  0xe6   : > { %v455_v37 = vadd.f32 %v454_v36, %v453_v35 }
  0xe8   : > { %906 = vpush %v455_v37 }
 0x119   : > { %s907_s28 = spop %906 }
 0x11a   : > { %s459_s10 = smul.f32 0.0625, %s907_s28 }
 0x11c   : > { %s461_s17 = sadd.f32 %s460_s14, %s459_s10 }
 0x11e   : > { %v462_v38 = vstv %s461_s17 }
 0x11f   : > { %464 = vst.msk [vmem:[#allocation7] sm:$0x1] %vm463_vm2, %v462_v38 }
 0x120 PF: > { %v485_v39 = vld [vmem:[%s1222_s29] sm:$0xff]  ;;  %v1084_v40 = vmov 0   ;;  %v500_v42 = vld [vmem:[#allocation2 + $0x8] sm:$0xff]  ;;  %v483_v45 = vlaneseq  ;;  %vm501_vm3 = vcmask 130048   ;;  %v1085_v48 = vmov 0.0   ;;  %p925_p13 = scmp.eq.s32.totalorder %s1163_s7, 2 }
 0x121   : > { %979 = vset.pattern.permute.xlu0 %v1084_v40  ;;  %v499_v41 = vld [vmem:[#allocation2] sm:$0xff]  ;;  %980 = vset.pattern.permute.xlu1 %v1084_v40  ;;  %v486_v44 = vld [vmem:[%s1222_s29 + $0x8] sm:$0xff]  ;;  %vm595_vm6 = vcmask 523264   ;;  %v1086_v10 = vmov 0.0|0.0   ;;  %vm1087_vm7 = vmmov 0   ;;  %vm644_vm8 = vcmask 130112  }
 0x122   : > { %488 = vperm.xlu0 %979, %v485_v39   ;;  %v897_v43 = vpack.c.bf16 %v500_v42, %v499_v41  ;;  %v1251_v46 = vand.u32 127, %v483_v45  ;;  %v584_v52 = vld [vmem:[%s1212_s16 + $0x8] sm:$0xff]  ;;  %v585_v53 = vld [vmem:[%s1212_s16 + $0x10] sm:$0xff]  ;;  %v587_v54 = vld [vmem:[%s1212_s16 + $0x20] sm:$0xff]  ;;  %901 = vmatprep.subr.bf16.mxu1 %v1086_v10  ;;  %v636_v15 = vshrl.u32 %v483_v45, 7  ;;  %vm664_vm9 = vcmask 1041409  }
 0x123   : > { %v583_v56 = vld [vmem:[%s1212_s16] sm:$0xff]  ;;  %v586_v0 = vld [vmem:[%s1212_s16 + $0x18] sm:$0xff]  ;;  %v588_v4 = vld [vmem:[%s1212_s16 + $0x28] sm:$0xff]  ;;  %894 = vmatprep.mubr.msk.f32.mxu1 %vm1087_vm7, %v1085_v48  ;;  %vm666_vm13 = vcmask 1042434   ;;  %v1088_v32 = vmov 1.0|1.0  }
 0x124   : > { %898 = vmatprep.subr.bf16.mxu0 %v897_v43  ;;  %v614_v8 = vld [vmem:[%s1227_s24] sm:$0xff]  ;;  %v615_v9 = vld [vmem:[%s1227_s24 + $0x8] sm:$0xff]  ;;  %v639_v16 = vadd.s32 4294967288, %v1251_v46  ;;  %v637_v19 = vsub.s32 %v1251_v46, %v636_v15  ;;  %s1089_s16 = smov [#allocation7]  }
 0x125   : > { %900 = vmatpush3.bf16.msra.mxu0 %v897_v43  ;;  %s750_s29 = sshll.u32 %s1089_s16, 4  ;;  %s751_s29 = int_to_ptr.vmem [resolvable:$true] %s750_s29 }
 0x126   : > { %491 = vperm.xlu0 %979, %v486_v44   ;;  %v642_v18 = vsub.s32 %v639_v16, %v636_v15  ;;  %s981_s24 = scalar_lea.vmem %s751_s29, 16  ;;  %s987_s20 = scalar_lea.vmem %s751_s29, 32 }
 0x127   : > { %p982_p0 = scmp.ne.s32.totalorder %s751_s29, %s981_s24  ;;  %p988_p3 = scmp.lt.s32.totalorder %s751_s29, %s751_s29 }
 0x128   : > { %p989_p4 = scmp.lt.s32.totalorder %s987_s20, %s981_s24 }
 0x129   : > { %p983_p1 = pnand %p982_p0, %p925_p13 }
 0x12a   : > { %p990_p5 = por %p989_p4, %p988_p3 }
 0x12b   : > { %p984_p2 = pneg %p983_p1 }
 0x12d   : > { %p991_p6 = pnand %p990_p5, %p984_p2 }
 0x1a1   : > { %v489_v47 = vpop.permute.xlu0 %488 }
 0x1a2   : > { %vm493_vm4 = vcmp.eq.s32.totalorder %v489_v47, %v1251_v46 }
 0x1a3   : > { %v860_v49 = vsel %vm493_vm4, 1.0, %v1085_v48 }
 0x1a4   : > { %887 = vmatprep.mubr.msk.f32.mxu0 %vm501_vm3, %v860_v49 }
 0x1a5   : > { %v492_v50 = vpop.permute.xlu0 %491 }
 0x1a6   : > { %vm494_vm5 = vcmp.eq.s32.totalorder %v492_v50, %v1251_v46 }
 0x1a7   : > { %v861_v51 = vsel %vm494_vm5, 1.0, %v1085_v48 }
 0x1a8   : > { %888 = vmatmul.mubr.msk.f32.vlgmr.msra.gmra.mrb[0].mxu0 %vm501_vm3, %v861_v51 }
 0x27b   : > { %v889_v55 = vpop.f32.mrb[0].mxu0 }
 0x27c   : > { %v574_v57 = vpop.f32.mrb[1].mxu0  ;;  %v590_v58 = vmul.f32 %v889_v55, %v584_v52  ;;  %v592_v3 = vmul.f32 %v889_v55, %v586_v0  ;;  %v594_v6 = vmul.f32 %v889_v55, %v588_v4 }
 0x27d   : > { %v591_v59 = vmul.f32 %v585_v53, %v574_v57  ;;  %v593_v60 = vmul.f32 %v587_v54, %v574_v57  ;;  %v589_v61 = vmul.f32 %v583_v56, %v574_v57 }
 0x27e   : > { %v599_v62 = vsel %vm595_vm6, %v590_v58, 0.0  ;;  %v605_v5 = vsel %vm595_vm6, %v592_v3, 0.0  ;;  %v611_v7 = vsel %vm595_vm6, %v594_v6, 0.0 }
 0x27f   : > { %600 = vadd.xlane.f32.xlu1 %v599_v62  ;;  %v602_v63 = vsel %vm595_vm6, %v591_v59, 0.0  ;;  %v608_v1 = vsel %vm595_vm6, %v593_v60, 0.0  ;;  %v596_v2 = vsel %vm595_vm6, %v589_v61, 0.0 }
 0x280   : > { %603 = vadd.xlane.f32.xlu0 %v602_v63 }
 0x283   : > { %597 = vadd.xlane.f32.xlu1 %v596_v2 }
 0x287   : > { %606 = vadd.xlane.f32.xlu1 %v605_v5 }
 0x28b   : > { %612 = vadd.xlane.f32.xlu1 %v611_v7 }
 0x29c   : > { %617 = vperm.xlu1 %980, %v614_v8  }
 0x2c0   : > { %609 = vadd.xlane.f32.xlu1 %v608_v1 }
 0x2d1   : > { %620 = vperm.xlu1 %980, %v615_v9  }
 0x30c   : > { %v601_v11 = vpop.xlane.xlu1 %600 }
 0x30d   : > { %v604_v20 = vpop.xlane.xlu0 %603  ;;  %v643_v28 = vrot.slane %v601_v11, %v642_v18 }
 0x30e   : > { %v649_v24 = vrot.slane %v604_v20, %v637_v19 }
 0x310   : > { %v598_v12 = vpop.xlane.xlu1 %597 }
 0x311   : > { %v638_v25 = vrot.slane %v598_v12, %v637_v19 }
 0x313   : > { %v645_v31 = vsel %vm644_vm8, %v643_v28, %v638_v25 }
 0x314   : > { %v607_v13 = vpop.xlane.xlu1 %606 }
 0x315   : > { %v653_v22 = vrot.slane %v607_v13, %v642_v18 }
 0x317   : > { %v654_v29 = vsel %vm644_vm8, %v653_v22, %v649_v24 }
 0x318   : > { %v613_v14 = vpop.xlane.xlu1 %612  ;;  %v665_v33 = vsel %vm664_vm9, %v654_v29, %v645_v31 }
 0x319   : > { %v662_v26 = vrot.slane %v613_v14, %v642_v18 }
 0x31c   : > { %v618_v17 = vpop.permute.xlu1 %617 }
 0x31d   : > { %vm622_vm10 = vcmp.eq.s32.totalorder %v618_v17, %v1251_v46 }
 0x34d   : > { %v610_v21 = vpop.xlane.xlu1 %609 }
 0x34e   : > { %v658_v23 = vrot.slane %v610_v21, %v637_v19 }
 0x350   : > { %v663_v30 = vsel %vm644_vm8, %v662_v26, %v658_v23 }
 0x351   : > { %v621_v27 = vpop.permute.xlu1 %620  ;;  %v667_v34 = vsel %vm666_vm13, %v663_v30, %v665_v33 }
 0x352   : > { %vm623_vm11 = vcmp.eq.s32.totalorder %v621_v27, %v1251_v46 }
 0x353   : > { %vm902_vm12 = vmpackc.low %vm623_vm11, %vm622_vm10 }
 0x354   : > { %903 = vmatpush3.bf16.msk.msra.mxu1 %vm902_vm12, %v1088_v32 }
 0x357   : > { %895 = vmatmul.mubr.msk.f32.vlgmr.msra.gmra.mrb[0].mxu1 %vm501_vm3, %v667_v34 }
 0x358   : > { %994 = shalt.err (!%p991_p6)
}
 0x359   : > { %s995_s22 = scalar_lea.hbm %s1342_s8, 16 }
 0x35a   : > { %p996_p7 = scmp.ne.s32.totalorder %s1342_s8, %s995_s22  ;;  %p1001_p10 = scmp.lt.u32.totalorder %s995_s22, %s1342_s8 }
 0x35c   : > { %p997_p8 = pnand %p996_p7, %p925_p13 }
 0x35e   : > { %p998_p9 = pneg %p997_p8 }
 0x360   : > { %p1003_p11 = pnand %p1001_p10, %p998_p9 }
 0x362   : > { %1006 = shalt.err (!%p1003_p11)
}
 0x363   : > { %918 = dma.vmem_to_hbm [thread:$0]  (%p925_p13), %s751_s29, 16, %s1342_s8, [#allocation6]   ;;  %v628_v35 = vld [vmem:[#allocation8] sm:$0x7]  ;;  %vm741_vm14 = vcmask 124928  }
 0x364   : > { %s1090_s14 = smov [#allocation8]  }
 0x365   : > { %s761_s28 = sshll.u32 %s1090_s14, 4  ;;  %s762_s28 = int_to_ptr.vmem [resolvable:$true] %s761_s28 }
 0x366   : > { %s1007_s10 = scalar_lea.vmem %s762_s28, 64  ;;  %p1014_p2 = scmp.lt.s32.totalorder %s762_s28, %s762_s28 }
 0x367   : > { %p1008_p12 = scmp.ne.s32.totalorder %s762_s28, %s1007_s10  ;;  %p1015_p3 = scmp.lt.s32.totalorder %s1007_s10, %s1007_s10 }
 0x369   : > { %p1009_p0 = pnand %p1008_p12, %p925_p13  ;;  %p1016_p4 = por %p1015_p3, %p1014_p2 }
 0x36b   : > { %p1010_p1 = pneg %p1009_p0 }
 0x36d   : > { %p1017_p5 = pnand %p1016_p4, %p1010_p1 }
 0x42a   : > { %v736_v36 = vpop.f32.mrb[0].mxu1 }
 0x42b   : > { %v740_v37 = vadd.f32 %v736_v36, %v628_v35  ;;  %v896_v38 = vpop.f32.mrb[1].mxu1 }
 0x42d   : > { %742 = vst.msk [vmem:[#allocation8] sm:$0x7] %vm741_vm14, %v740_v37 }
 0x42e   : > { %1020 = shalt.err (!%p1017_p5)
}
 0x42f   : > { %s1021_s29 = scalar_lea.hbm %s1343_s9, 64 }
 0x430   : > { %p1022_p6 = scmp.ne.s32.totalorder %s1343_s9, %s1021_s29  ;;  %p1027_p9 = scmp.lt.u32.totalorder %s1021_s29, %s1343_s9 }
 0x432   : > { %p1023_p7 = pnand %p1022_p6, %p925_p13 }
 0x434   : > { %p1024_p8 = pneg %p1023_p7 }
 0x436   : > { %p1029_p10 = pnand %p1027_p9, %p1024_p8 }
 0x438   : > { %1032 = shalt.err (!%p1029_p10)
}
 0x439   : > { %920 = dma.vmem_to_hbm [thread:$0]  (%p925_p13), %s762_s28, 64, %s1343_s9, [#allocation9]  }
 0x43a   : > { %1054 = dma.done.wait (%p925_p13), [#allocation6], 16  }
 0x43b   : > { %1056 = vsyncadd (%p925_p13), [#allocation6], 4294967280 }
 0x43c   : > { %1058 = dma.done.wait (%p925_p13), [#allocation9], 64  }
 0x43d   : > { %1060 = vsyncadd (%p925_p13), [#allocation9], 4294967232 }
 0x43e PF: > { %p23_p11 = scmp.ge.s32.totalorder %s1166_s15, 5   ;;  %s1346_s11 = smov %s1067_s12 }
 0x43f   : > { %s1347_s12 = smov %s1071_s13  ;;  %s1348_s13 = smov %s1176_s18 }
 0x440   : > { %s1349_s14 = smov %s1166_s15  ;;  %25 = sbr.rel (!%p23_p11) target bundleno = 7 (0x7), region = 112 }
 0x447   :  { %778 = vsyncpa [#allocation5], 1 }
 0x448   :  { %780 = vsyncpa [#allocation5 + $0x1], 1 }
 0x449   :  { %781 = vsyncpa [#allocation6], 1 }
 0x44a   :  { %783 = vsyncpa [#allocation6 + $0x1], 1 }
 0x44b   :  { %784 = vsyncpa [#allocation9], 1 }

</bundles_post_ra>
